<compile_context>
chip_gen: v6e
topology: v6e:2x2x1
jax: 0.10.0
libtpu: 0.0.40
codegen_flags: <defaults>
</compile_context>

<pallas_src>
import jax
import jax.numpy as jnp
from jax.experimental import pallas as pl
from jax.experimental.pallas import tpu as pltpu

LAMBDA_OBJ = 5.0
LAMBDA_NOOBJ = 1.0
LAMBDA_COORD = 5.0
LAMBDA_CLASS = 1.0
IGNORE_THRESHOLD = 0.5

MAX_SUBLANE_ROWS = 1024     # 1024 * 128 = 131072 cells per grid step (~1.5 MB/step)


def _softplus(z):
    # numerically stable softplus using only exp/log (Mosaic-safe EUP ops)
    return jnp.maximum(z, 0.0) + jnp.log(1.0 + jnp.exp(-jnp.abs(z)))


def _num_tensorcores():
    # 2-way "parallel" outer grid split only helps on 2-TensorCore chips (v7x).
    try:
        kind = jax.devices()[0].device_kind.lower()
        return 2 if ("v7" in kind or "7x" in kind) else 1
    except Exception:
        return 1


# ---------------------------------------------------------------------------
# Pallas kernel: dense (TS, 128) tiles, obj-BCE / noobj-BCE lane-wise sums
# ---------------------------------------------------------------------------
def _conf_loss_kernel(conf_ref, mask_ref, noobj_ref, out_ref):
    """conf_ref : (TS, 128) raw confidence logits
       mask_ref : (TS, 128) objectness mask (1 at assigned cells, else 0)
       noobj_ref: (TS, 128) no-object mask (0 where anchor IoU > threshold)
       out_ref  : (16, 128) VMEM-resident accumulator across the chunk axis:
                  rows 0:8  = lane-wise partials of mask  * BCE(sigmoid(z), 1)
                  rows 8:16 = lane-wise partials of noobj * BCE(sigmoid(z), 0)"""
    j = pl.program_id(1)

    @pl.when(j == 0)
    def _init():
        out_ref[...] = jnp.zeros_like(out_ref)

    z = conf_ref[...].astype(jnp.float32)   # cast in-kernel (bf16 inputs welcome)
    m = mask_ref[...]
    no = noobj_ref[...]
    ts = z.shape[0]

    sp = _softplus(z)                       # one EUP pass shared by both BCE terms
    # logit-form BCE: mask*(sp - z) == -mask*log(sigmoid(z)); noobj*sp == -noobj*log(1-sigmoid(z))
    obj = (m * (sp - z)).reshape(ts // 8, 8, 128).sum(axis=0)    # (8, 128)
    noo = (no * sp).reshape(ts // 8, 8, 128).sum(axis=0)         # (8, 128)
    # single fused accumulator read-modify-write per step
    out_ref[...] += jnp.concatenate([obj, noo], axis=0)          # (16, 128)


def _conf_loss_sums(conf_cells, mask_cells, noobj_cells, n_cells):
    """sum_n mask*BCE(sigmoid(z),1) and sum_n noobj*BCE(sigmoid(z),0) via Pallas."""
    nsplit = _num_tensorcores()
    rows = pl.cdiv(n_cells, 128)
    rows_per_split = pl.cdiv(rows, nsplit)
    ts = min(MAX_SUBLANE_ROWS, pl.cdiv(rows_per_split, 8) * 8)
    n_chunks = pl.cdiv(rows_per_split, ts)
    rows_pad = nsplit * n_chunks * ts
    pad = rows_pad * 128 - n_cells

    # padded cells: conf=0, mask=0, noobj=0 -> contribute exactly 0
    def prep(v):
        return jnp.pad(v, (0, pad)).reshape(rows_pad, 128)

    conf2d = prep(conf_cells)
    mask2d = prep(mask_cells)
    noobj2d = prep(noobj_cells)

    lane_map = lambda s, j: (s * n_chunks + j, 0)
    cost = pl.CostEstimate(
        flops=int(rows_pad * 128 * 12),
        transcendentals=int(rows_pad * 128 * 2),
        bytes_accessed=int(4 * (3 * rows_pad * 128 + nsplit * 16 * 128)))

    partials = pl.pallas_call(
        _conf_loss_kernel,
        out_shape=jax.ShapeDtypeStruct((nsplit * 16, 128), jnp.float32),
        grid=(nsplit, n_chunks),
        in_specs=[
            pl.BlockSpec((ts, 128), lane_map),
            pl.BlockSpec((ts, 128), lane_map),
            pl.BlockSpec((ts, 128), lane_map),
        ],
        out_specs=pl.BlockSpec((16, 128), lambda s, j: (s, 0)),
        compiler_params=pltpu.CompilerParams(
            dimension_semantics=("parallel", "arbitrary")),
        cost_estimate=cost,
    )(conf2d, mask2d, noobj2d)

    sums = partials.reshape(nsplit, 2, 8, 128).sum(axis=(0, 2, 3))   # (2,)
    return sums[0], sums[1]


# ---------------------------------------------------------------------------
# Full loss (vectorized target encoding + positive-cell gather + Pallas kernel)
# ---------------------------------------------------------------------------
def yolov3_loss(inp, target, anchors, num_classes, input_size):
    B, ch, H, W = inp.shape
    A = anchors.shape[0]
    F = 5 + num_classes
    assert ch == A * F
    N = B * A * H * W
    T = target.shape[1]
    f32 = jnp.float32

    scale = jnp.array([W / input_size, H / input_size], dtype=f32)
    scaled_anchors = anchors.astype(f32) * scale                 # (A, 2)
    aw = scaled_anchors[:, 0]
    ah = scaled_anchors[:, 1]

    # ---------------- vectorized target encoding (no per-box Python loops) --
    tgt = target.astype(f32)
    valid = jnp.sum(tgt, axis=-1) > 0                            # (B, T)
    gx = tgt[..., 0] * W
    gy = tgt[..., 1] * H
    gw = tgt[..., 2] * W
    gh = tgt[..., 3] * H
    gi = gx.astype(jnp.int32)                                    # int() truncation
    gj = gy.astype(jnp.int32)
    cid = tgt[..., 4].astype(jnp.int32)

    # torch reference would index OOB for cx/cy == 1.0; we drop such boxes.
    in_bounds = (gi >= 0) & (gi < W) & (gj >= 0) & (gj < H)
    valid = valid & in_bounds

    # anchor IoU of [0,0,gw,gh] vs [0,0,aw,ah]
    # TODO(synk): bbox_iou source not given; standard IoU (no +1 px offset) assumed.
    inter = jnp.minimum(gw[..., None], aw) * jnp.minimum(gh[..., None], ah)
    union = (gw * gh)[..., None] + aw * ah - inter
    iou = inter / (union + 1e-16)                                # (B, T, A)
    best_n = jnp.argmax(iou, axis=-1).astype(jnp.int32)          # (B, T)

    b_idx = jnp.arange(B, dtype=jnp.int32)[:, None]              # (B, 1)
    a_idx = jnp.arange(A, dtype=jnp.int32)[None, None, :]        # (1, 1, A)
    sentinel = jnp.int32(N)

    # objectness mask over all N cells (duplicate indices just re-set 1.0)
    pos_flat = ((b_idx * A + best_n) * H + gj) * W + gi          # (B, T)
    pos_idx = jnp.where(valid, pos_flat, sentinel).reshape(-1)   # (B*T,)
    mask_cells = jnp.zeros((N,), f32).at[pos_idx].set(1.0, mode="drop")

    # no-object mask: zero every (b, a, gj, gi) whose anchor IoU > threshold
    # (as in the reference, the assigned best-anchor cell is NOT additionally zeroed)
    ign = valid[..., None] & (iou > IGNORE_THRESHOLD)            # (B, T, A)
    noobj_idx = jnp.where(
        ign,
        ((b_idx[..., None] * A + a_idx) * H + gj[..., None]) * W + gi[..., None],
        sentinel).reshape(-1)
    noobj_cells = jnp.ones((N,), f32).at[noobj_idx].set(0.0, mode="drop")

    # ---- per-cell "winner" boxes: reproduce the reference scatter semantics
    # (later annotations overwrite tx/ty/tw/th at the same cell; tcls only
    #  *sets* ones, so classes of co-located boxes accumulate).
    bt = B * T
    valid_f = valid.reshape(-1)
    order = jnp.arange(bt, dtype=jnp.int32)
    same_cell = pos_idx[:, None] == pos_idx[None, :]             # (BT, BT)
    overwritten = jnp.any(
        same_cell & valid_f[None, :] & (order[None, :] > order[:, None]), axis=1)
    win = valid_f & jnp.logical_not(overwritten)                 # (BT,)
    win_w = win.astype(f32)
    n_pos = jnp.sum(win_w)                                       # == sum(mask_cells)

    # per-box ground truth (only winners contribute)
    tx_b = (gx - gi.astype(f32)).reshape(-1)
    ty_b = (gy - gj.astype(f32)).reshape(-1)
    tw_b = (gw / aw[best_n]).reshape(-1)
    th_b = (gh / ah[best_n]).reshape(-1)
    onehot = jax.nn.one_hot(cid.reshape(-1), num_classes, dtype=f32)   # (BT, C)
    both_valid = same_cell & valid_f[None, :] & valid_f[:, None]
    tcls_b = jnp.minimum(both_valid.astype(f32) @ onehot, 1.0)          # (BT, C)

    # ---- gather the <= B*T positive-cell predictions straight from NCHW input
    # (no [F, N] transpose, no [C, N] tcls array in HBM)
    b_f = jnp.broadcast_to(b_idx, (B, T)).reshape(-1)
    base = (((b_f * A + best_n.reshape(-1)) * F) * H
            + gj.reshape(-1)) * W + gi.reshape(-1)                       # (BT,)
    feat_off = jnp.arange(F, dtype=jnp.int32) * (H * W)
    gather_idx = jnp.where(win[:, None], base[:, None] + feat_off[None, :], 0)
    pvals = jnp.take(inp.reshape(-1), gather_idx, mode="clip").astype(f32)
    pvals = jnp.where(win[:, None], pvals, 0.0)   # keep non-winner rows benign

    px = jax.nn.sigmoid(pvals[:, 0])
    py = jax.nn.sigmoid(pvals[:, 1])
    pw = jnp.exp(pvals[:, 2])     # exp only at positive cells (removes 0*inf hazard)
    ph = jnp.exp(pvals[:, 3])
    zc = pvals[:, 5:]                                                     # (BT, C)

    sum_x = jnp.sum(win_w * (px - tx_b) ** 2)
    sum_y = jnp.sum(win_w * (py - ty_b) ** 2)
    sum_w = jnp.sum(win_w * (pw - tw_b) ** 2)
    sum_h = jnp.sum(win_w * (ph - th_b) ** 2)
    sum_cls = jnp.sum(win_w * jnp.sum(_softplus(zc) - tcls_b * zc, axis=-1))

    # ---- Pallas kernel: the full-grid objectness / no-object BCE reduction --
    # (slice + cast fuse into a single cheap N-float copy under jit)
    conf_cells = inp.reshape(B, A, F, H, W)[:, :, 4, :, :].astype(f32).reshape(N)
    sum_obj, sum_noobj = _conf_loss_sums(conf_cells, mask_cells, noobj_cells, N)

    n_elem = jnp.float32(N)                  # reduction='mean' over all N cells
    loss_x = sum_x / n_elem
    loss_y = sum_y / n_elem
    loss_w = sum_w / n_elem
    loss_h = sum_h / n_elem
    box_loss = LAMBDA_COORD * (loss_x + loss_y + loss_w + loss_h)
    object_loss = LAMBDA_OBJ * (sum_obj / n_elem)
    no_object_loss = LAMBDA_NOOBJ * (sum_noobj / n_elem)
    # 0/0 -> NaN when there are no positive cells, matching torch BCELoss
    # reduction='mean' on an empty selection.
    class_loss = LAMBDA_CLASS * (sum_cls / (n_pos * num_classes))
    loss = (box_loss + object_loss + no_object_loss + class_loss) * B
    return loss


if __name__ == "__main__":
    key = jax.random.PRNGKey(0)
    num_classes = 3
    input_size = 64
    anchors = jnp.array([[10.0, 13.0], [16.0, 30.0], [33.0, 23.0]],
                        dtype=jnp.float32)
    B, H, W = 2, 16, 16
    A = anchors.shape[0]
    T = 4

    k1, k2, k3 = jax.random.split(key, 3)
    x = 0.5 * jax.random.normal(
        k1, (B, A * (5 + num_classes), H, W), dtype=jnp.float32)

    boxes = jax.random.uniform(k2, (B, T, 4), minval=0.1, maxval=0.8,
                               dtype=jnp.float32)
    cids = jax.random.randint(k3, (B, T, 1), 0, num_classes).astype(jnp.float32)
    target = jnp.concatenate([boxes, cids], axis=-1)
    # zero-out some rows (invalid annotations, skipped by the encoder)
    valid = jnp.array([[1, 1, 1, 0], [1, 1, 0, 0]], dtype=jnp.float32)[..., None]
    target = target * valid

    loss_fn = jax.jit(lambda a, t, anc: yolov3_loss(a, t, anc, num_classes,
                                                    input_size))
    loss = loss_fn(x, target, anchors)
    jax.block_until_ready(loss)
    print("KERNEL_OK")
</pallas_src>

<mosaic_0001>
module attributes {stable_mosaic.version = 11 : i64} {
  func.func @_conf_loss_kernel(%arg0: i32, %arg1: i32, %arg2: memref<16x128xf32, #tpu.memory_space<vmem>>, %arg3: memref<16x128xf32, #tpu.memory_space<vmem>>, %arg4: memref<16x128xf32, #tpu.memory_space<vmem>>, %arg5: memref<16x128xf32, #tpu.memory_space<vmem>>) attributes {dimension_semantics = [#tpu.dimension_semantics<parallel>, #tpu.dimension_semantics<arbitrary>], iteration_bounds = array<i64: 1, 1>, scalar_prefetch = 0 : i64, scratch_operands = 0 : i64, tpu.core_type = #tpu.core_type<tc>, window_params = [{transform_indices = @transform_0, window_bounds = array<i64: 16, 128>}, {transform_indices = @transform_1, window_bounds = array<i64: 16, 128>}, {transform_indices = @transform_2, window_bounds = array<i64: 16, 128>}, {transform_indices = @transform_3, window_bounds = array<i64: 16, 128>}]} {
    %c0_i32 = arith.constant 0 : i32
    %0 = arith.cmpi eq, %arg1, %c0_i32 : i32
    %1 = arith.extui %0 : i1 to i32
    %c0_i32_0 = arith.constant 0 : i32
    %2 = arith.cmpi ne, %1, %c0_i32_0 : i32
    scf.if %2 {
      %cst_14 = arith.constant 0.000000e+00 : f32
      %27 = vector.broadcast %cst_14 : f32 to vector<16x128xf32>
      %c0_15 = arith.constant 0 : index
      %c0_16 = arith.constant 0 : index
      %28 = vector.load %arg5[%c0_15, %c0_16] : memref<16x128xf32, #tpu.memory_space<vmem>>, vector<16x128xf32>
      tpu.vector_store %arg5[%c0_15, %c0_16], %27 {strides = array<i32>} : memref<16x128xf32, #tpu.memory_space<vmem>>, vector<16x128xf32>,
    } else {
    }
    %c0 = arith.constant 0 : index
    %c0_1 = arith.constant 0 : index
    %3 = vector.load %arg2[%c0, %c0_1] : memref<16x128xf32, #tpu.memory_space<vmem>>, vector<16x128xf32>
    %c0_2 = arith.constant 0 : index
    %c0_3 = arith.constant 0 : index
    %4 = vector.load %arg3[%c0_2, %c0_3] : memref<16x128xf32, #tpu.memory_space<vmem>>, vector<16x128xf32>
    %c0_4 = arith.constant 0 : index
    %c0_5 = arith.constant 0 : index
    %5 = vector.load %arg4[%c0_4, %c0_5] : memref<16x128xf32, #tpu.memory_space<vmem>>, vector<16x128xf32>
    %cst = arith.constant 0.000000e+00 : f32
    %6 = vector.broadcast %cst : f32 to vector<16x128xf32>
    %7 = arith.maximumf %3, %6 : vector<16x128xf32>
    %8 = math.absf %3 : vector<16x128xf32>
    %cst_6 = arith.constant 0.000000e+00 : f32
    %9 = vector.broadcast %cst_6 : f32 to vector<16x128xf32>
    %10 = arith.subf %9, %8 : vector<16x128xf32>
    %11 = math.exp %10 : vector<16x128xf32>
    %cst_7 = arith.constant 1.000000e+00 : f32
    %12 = vector.broadcast %cst_7 : f32 to vector<16x128xf32>
    %13 = arith.addf %12, %11 : vector<16x128xf32>
    %14 = math.log %13 : vector<16x128xf32>
    %15 = arith.addf %7, %14 : vector<16x128xf32>
    %16 = arith.subf %15, %3 : vector<16x128xf32>
    %17 = arith.mulf %4, %16 : vector<16x128xf32>
    %18 = vector.shape_cast %17 : vector<16x128xf32> to vector<2x8x128xf32>
    %cst_8 = arith.constant dense<0.000000e+00> : vector<8x128xf32>
    %19 = vector.multi_reduction <add>, %18, %cst_8 [0] : vector<2x8x128xf32> to vector<8x128xf32>
    %20 = arith.mulf %5, %15 : vector<16x128xf32>
    %21 = vector.shape_cast %20 : vector<16x128xf32> to vector<2x8x128xf32>
    %cst_9 = arith.constant dense<0.000000e+00> : vector<8x128xf32>
    %22 = vector.multi_reduction <add>, %21, %cst_9 [0] : vector<2x8x128xf32> to vector<8x128xf32>
    %c0_10 = arith.constant 0 : index
    %c0_11 = arith.constant 0 : index
    %23 = vector.load %arg5[%c0_10, %c0_11] : memref<16x128xf32, #tpu.memory_space<vmem>>, vector<16x128xf32>
    %24 = tpu.concatenate %19, %22 in 0 : vector<8x128xf32>, vector<8x128xf32> -> vector<16x128xf32>
    %25 = arith.addf %23, %24 : vector<16x128xf32>
    %c0_12 = arith.constant 0 : index
    %c0_13 = arith.constant 0 : index
    %26 = vector.load %arg5[%c0_12, %c0_13] : memref<16x128xf32, #tpu.memory_space<vmem>>, vector<16x128xf32>
    tpu.vector_store %arg5[%c0_12, %c0_13], %25 {strides = array<i32>} : memref<16x128xf32, #tpu.memory_space<vmem>>, vector<16x128xf32>,
    return
  }
  func.func @transform_0(%arg0: i32, %arg1: i32) -> (i32, i32) {
    %c1_i32 = arith.constant 1 : i32
    %0 = arith.muli %arg0, %c1_i32 : i32
    %1 = arith.addi %0, %arg1 : i32
    %c0_i32 = arith.constant 0 : i32
    %c0_i32_0 = arith.constant 0 : i32
    return %1, %c0_i32 : i32, i32
  }
  func.func @transform_1(%arg0: i32, %arg1: i32) -> (i32, i32) {
    %c1_i32 = arith.constant 1 : i32
    %0 = arith.muli %arg0, %c1_i32 : i32
    %1 = arith.addi %0, %arg1 : i32
    %c0_i32 = arith.constant 0 : i32
    %c0_i32_0 = arith.constant 0 : i32
    return %1, %c0_i32 : i32, i32
  }
  func.func @transform_2(%arg0: i32, %arg1: i32) -> (i32, i32) {
    %c1_i32 = arith.constant 1 : i32
    %0 = arith.muli %arg0, %c1_i32 : i32
    %1 = arith.addi %0, %arg1 : i32
    %c0_i32 = arith.constant 0 : i32
    %c0_i32_0 = arith.constant 0 : i32
    return %1, %c0_i32 : i32, i32
  }
  func.func @transform_3(%arg0: i32, %arg1: i32) -> (i32, i32) {
    %c0_i32 = arith.constant 0 : i32
    %c0_i32_0 = arith.constant 0 : i32
    return %arg0, %c0_i32 : i32, i32
  }
}

</mosaic_0001>

<bundles_post_ra>
// kernel: eq.24
= control target key start
LH: loop header
LB: loop body
LE: loop exit
PB: predicated region body
PF: predicated region fallthrough
CT: control target
= control target key end

     0   :  { %vm8_vm0 = vcmask 31744   ;;  %vm14_vm1 = vcmask 64544   ;;  %s42_s0 = inlined_call_operand.vmem [shape: s32[2,4], index: 0, kind: input, shape index: {}]   ;;  %s43_s1 = inlined_call_operand.vmem [shape: s32[8], index: 1, kind: output, shape index: {}]  }
   0x1   :  { %v5_v0 = vld [vmem:[%s42_s0] sm:$0x3]  ;;  %s25_s0 = smov 4  }
   0x2   :  { %6 = vst [vmem:[#allocation1] sm:$0x3] %v5_v0 }
   0x9   :  { %v11_v1 = vld [vmem:[#allocation1 + $0x1] sm:$0x1]   ;;  %v7_v2 = vld [vmem:[#allocation1] sm:$0x1]  }
   0xa   :  { %12 = vrot.lane.b32.xlu0 %v11_v1, %s25_s0  ;;  %9 = vst.msk [vmem:[#allocation0] sm:$0x1] %vm8_vm0, %v7_v2  }
  0x7c   :  { %v13_v3 = vpop.permute.xlu0 %12  }
  0x7d   :  { %15 = vst.msk [vmem:[#allocation0] sm:$0x1] %vm14_vm1, %v13_v3  }
  0x84   :  { %v20_v4 = vld [vmem:[#allocation0] sm:$0x1] }
  0x85   :  { %23 = vst [vmem:[%s43_s1] sm:$0x1] %v20_v4 }

// kernel: squeeze.29
= control target key start
LH: loop header
LB: loop body
LE: loop exit
PB: predicated region body
PF: predicated region fallthrough
CT: control target
= control target key end

     0   :  { %vm4_vm0 = vcmask 1047556   ;;  %s169_s14 = smov 96   ;;  %s170_s15 = smov 112   ;;  %vm6_vm1 = vcmask 130048   ;;  %vm21_vm2 = vcmask 1048448   ;;  %vm38_vm3 = vcmask 917248   ;;  %s314_s0 = inlined_call_operand.vmem [shape: f32[2,3,1,16,16], index: 0, kind: input, shape index: {}]   ;;  %s315_s1 = inlined_call_operand.vmem [shape: f32[1536], index: 1, kind: output, shape index: {}]  }
   0x1   :  { %v138_v0 = vld [vmem:[%s314_s0 + $0x6] ss:$8 sm:$0xf]   ;;  %v134_v3 = vld [vmem:[%s314_s0 + $0x7] ss:$8 sm:$0xf]  }
   0x2   :  { %v139_v1 = vld [vmem:[%s314_s0 + $0x6] ss:$8 sm:$0xf0]   ;;  %v135_v4 = vld [vmem:[%s314_s0 + $0x7] ss:$8 sm:$0xf0]  }
   0x3   :  { %v35_v2 = vsel %vm4_vm0, %v139_v1, %v138_v0  ;;  %v18_v5 = vsel %vm4_vm0, %v135_v4, %v134_v3  ;;  %v140_v6 = vld [vmem:[%s314_s0 + $0x46] ss:$8 sm:$0xf]   ;;  %v136_v7 = vld [vmem:[%s314_s0 + $0x47] ss:$8 sm:$0xf]  }
   0x4   :  { %36 = vrot.lane.b32.xlu1 %v35_v2, %s169_s14  ;;  %19 = vrot.lane.b32.xlu0 %v18_v5, %s170_s15  ;;  %v142_v8 = vld [vmem:[%s314_s0 + $0x5] ss:$8 sm:$0xf]   ;;  %v146_v12 = vld [vmem:[%s314_s0 + $0x4] ss:$8 sm:$0xf]  }
   0x5   :  { %v143_v9 = vld [vmem:[%s314_s0 + $0x5] ss:$8 sm:$0xf0]   ;;  %v147_v13 = vld [vmem:[%s314_s0 + $0x4] ss:$8 sm:$0xf0]  }
   0x6   :  { %v144_v10 = vld [vmem:[%s314_s0 + $0x45] ss:$8 sm:$0xf]   ;;  %v52_v11 = vsel %vm4_vm0, %v143_v9, %v142_v8  ;;  %s171_s30 = smov 80   ;;  %v69_v16 = vsel %vm4_vm0, %v147_v13, %v146_v12  ;;  %s173_s25 = smov 48   ;;  %vm55_vm4 = vcmask 786048  }
   0x7   :  { %v148_v14 = vld [vmem:[%s314_s0 + $0x44] ss:$8 sm:$0xf]   ;;  %v150_v15 = vld [vmem:[%s314_s0 + $0x3] ss:$8 sm:$0xf]  }
   0x8   :  { %42 = vrot.lane.b32.xlu1 %v140_v6, %s169_s14  ;;  %25 = vrot.lane.b32.xlu0 %v136_v7, %s170_s15  ;;  %v2_v17 = vld [vmem:[%s314_s0] ss:$8 sm:$0xf]   ;;  %v151_v19 = vld [vmem:[%s314_s0 + $0x3] ss:$8 sm:$0xf0]  }
   0x9   :  { %v3_v18 = vld [vmem:[%s314_s0] ss:$8 sm:$0xf0]   ;;  %s172_s14 = smov 64   ;;  %v86_v23 = vsel %vm4_vm0, %v151_v19, %v150_v15  ;;  %s174_s3 = smov 32   ;;  %vm72_vm5 = vcmask 654848  }
   0xa   :  { %v5_v20 = vsel %vm4_vm0, %v3_v18, %v2_v17  ;;  %v132_v21 = vld [vmem:[%s314_s0 + $0x40] ss:$8 sm:$0xf]   ;;  %v152_v22 = vld [vmem:[%s314_s0 + $0x43] ss:$8 sm:$0xf]  }
   0xb   :  { %7 = vst.msk [vmem:[%s315_s1] sm:$0xff] %vm6_vm1, %v5_v20   ;;  %133 = vst.msk [vmem:[%s315_s1 + $0x8] sm:$0xf] %vm6_vm1, %v132_v21   ;;  %v154_v24 = vld [vmem:[%s314_s0 + $0x2] ss:$8 sm:$0xf]  }
   0xc   :  { %59 = vrot.lane.b32.xlu1 %v144_v10, %s171_s30  ;;  %53 = vrot.lane.b32.xlu0 %v52_v11, %s171_s30  ;;  %v155_v25 = vld [vmem:[%s314_s0 + $0x2] ss:$8 sm:$0xf0]   ;;  %v158_v28 = vld [vmem:[%s314_s0 + $0x1] ss:$8 sm:$0xf]  }
   0xd   :  { %v156_v26 = vld [vmem:[%s314_s0 + $0x42] ss:$8 sm:$0xf]   ;;  %v103_v27 = vsel %vm4_vm0, %v155_v25, %v154_v24  ;;  %v159_v29 = vld [vmem:[%s314_s0 + $0x1] ss:$8 sm:$0xf0]  }
   0xe   :  { %v160_v30 = vld [vmem:[%s314_s0 + $0x41] ss:$8 sm:$0xf]   ;;  %v120_v31 = vsel %vm4_vm0, %v159_v29, %v158_v28  ;;  %s175_s0 = smov 16   ;;  %vm89_vm6 = vcmask 523648   ;;  %vm106_vm7 = vcmask 392448  }
   0xf   :  { %vm123_vm8 = vcmask 261248  }
  0x10   :  { %76 = vrot.lane.b32.xlu1 %v148_v14, %s172_s14  ;;  %70 = vrot.lane.b32.xlu0 %v69_v16, %s172_s14 }
  0x14   :  { %93 = vrot.lane.b32.xlu1 %v152_v22, %s173_s25  ;;  %87 = vrot.lane.b32.xlu0 %v86_v23, %s173_s25 }
  0x18   :  { %110 = vrot.lane.b32.xlu1 %v156_v26, %s174_s3  ;;  %104 = vrot.lane.b32.xlu0 %v103_v27, %s174_s3 }
  0x1c   :  { %127 = vrot.lane.b32.xlu1 %v160_v30, %s175_s0  ;;  %121 = vrot.lane.b32.xlu0 %v120_v31, %s175_s0 }
  0x76   :  { %v37_v32 = vpop.permute.xlu1 %36   ;;  %v20_v33 = vpop.permute.xlu0 %19  }
  0x77   :  { %22 = vst.msk [vmem:[%s315_s1] sm:$0xff] %vm21_vm2, %v20_v33  }
  0x78   :  { %39 = vst.msk [vmem:[%s315_s1] sm:$0xff] %vm38_vm3, %v37_v32  }
  0x7a   :  { %v43_v34 = vpop.permute.xlu1 %42   ;;  %v26_v35 = vpop.permute.xlu0 %25  }
  0x7b   :  { %137 = vst.msk [vmem:[%s315_s1 + $0x8] sm:$0xf] %vm21_vm2, %v26_v35  }
  0x7c   :  { %141 = vst.msk [vmem:[%s315_s1 + $0x8] sm:$0xf] %vm38_vm3, %v43_v34  }
  0x7e   :  { %v60_v36 = vpop.permute.xlu1 %59   ;;  %v54_v37 = vpop.permute.xlu0 %53  }
  0x7f   :  { %145 = vst.msk [vmem:[%s315_s1 + $0x8] sm:$0xf] %vm55_vm4, %v60_v36   ;;  %56 = vst.msk [vmem:[%s315_s1] sm:$0xff] %vm55_vm4, %v54_v37  }
  0x82   :  { %v77_v38 = vpop.permute.xlu1 %76   ;;  %v71_v39 = vpop.permute.xlu0 %70  }
  0x83   :  { %149 = vst.msk [vmem:[%s315_s1 + $0x8] sm:$0xf] %vm72_vm5, %v77_v38   ;;  %73 = vst.msk [vmem:[%s315_s1] sm:$0xff] %vm72_vm5, %v71_v39  }
  0x86   :  { %v94_v40 = vpop.permute.xlu1 %93   ;;  %v88_v41 = vpop.permute.xlu0 %87  }
  0x87   :  { %153 = vst.msk [vmem:[%s315_s1 + $0x8] sm:$0xf] %vm89_vm6, %v94_v40   ;;  %90 = vst.msk [vmem:[%s315_s1] sm:$0xff] %vm89_vm6, %v88_v41  }
  0x8a   :  { %v111_v42 = vpop.permute.xlu1 %110   ;;  %v105_v43 = vpop.permute.xlu0 %104  }
  0x8b   :  { %157 = vst.msk [vmem:[%s315_s1 + $0x8] sm:$0xf] %vm106_vm7, %v111_v42   ;;  %107 = vst.msk [vmem:[%s315_s1] sm:$0xff] %vm106_vm7, %v105_v43  }
  0x8e   :  { %v128_v44 = vpop.permute.xlu1 %127   ;;  %v122_v45 = vpop.permute.xlu0 %121  }
  0x8f   :  { %161 = vst.msk [vmem:[%s315_s1 + $0x8] sm:$0xf] %vm123_vm8, %v128_v44   ;;  %124 = vst.msk [vmem:[%s315_s1] sm:$0xff] %vm123_vm8, %v122_v45  }

// kernel: _lambda_.1
= control target key start
LH: loop header
LB: loop body
LE: loop exit
PB: predicated region body
PF: predicated region fallthrough
CT: control target
= control target key end

     0   :  { %s199_s0 = inlined_call_operand.vmem [shape: f32[16,128], index: 0, kind: input, shape index: {}]   ;;  %s200_s2 = inlined_call_operand.vmem [shape: f32[16,128], index: 2, kind: input, shape index: {}]   ;;  %s201_s1 = inlined_call_operand.vmem [shape: f32[16,128], index: 1, kind: input, shape index: {}]   ;;  %s202_s3 = inlined_call_operand.vmem [shape: f32[16,128], index: 3, kind: output, shape index: {}]  }
   0x1   :  { %v86_v0 = vld [vmem:[%s199_s0] sm:$0xff]  ;;  %v87_v1 = vld [vmem:[%s199_s0 + $0x8] sm:$0xff] }
   0x2   :  { %v94_v2 = vand.u32 2147483647, %v86_v0  ;;  %v95_v3 = vand.u32 2147483647, %v87_v1  ;;  %v92_v12 = vmax.f32 %v86_v0, 0.0  ;;  %v93_v14 = vmax.f32 %v87_v1, 0.0 }
   0x3   :  { %v90_v18 = vld [vmem:[%s200_s2] sm:$0xff]  ;;  %v91_v20 = vld [vmem:[%s200_s2 + $0x8] sm:$0xff] }
   0x4   :  { %v96_v4 = vsub.f32 0.0, %v94_v2  ;;  %v97_v5 = vsub.f32 0.0, %v95_v3  ;;  %v88_v21 = vld [vmem:[%s201_s1] sm:$0xff]  ;;  %v89_v23 = vld [vmem:[%s201_s1 + $0x8] sm:$0xff] }
   0x6   :  { %v98_v6 = vmul.f32 1.442695, %v96_v4  ;;  %v100_v7 = vmul.f32 1.442695, %v97_v5 }
   0x8   :  { %147 = vpow2.f32 %v98_v6 }
   0x9   :  { %149 = vpow2.f32 %v100_v7 }
  0x15   :  { %v148_v8 = vpop.eup %147 }
  0x16   :  { %v150_v9 = vpop.eup %149  ;;  %v102_v10 = vadd.f32 1.0, %v148_v8 }
  0x17   :  { %v103_v11 = vadd.f32 1.0, %v150_v9 }
  0x18   :  { %151 = vlog2.f32 %v102_v10 }
  0x19   :  { %153 = vlog2.f32 %v103_v11 }
  0x25   :  { %v152_v13 = vpop.eup %151 }
  0x26   :  { %v154_v15 = vpop.eup %153  ;;  %v105_v16 = vmul.f32 0.6931472, %v152_v13 }
  0x27   :  { %v107_v17 = vmul.f32 0.6931472, %v154_v15 }
  0x28   :  { %v108_v19 = vadd.f32 %v105_v16, %v92_v12 }
  0x29   :  { %v109_v22 = vadd.f32 %v107_v17, %v93_v14 }
  0x2a   :  { %v110_v24 = vsub.f32 %v108_v19, %v86_v0  ;;  %v115_v25 = vmul.f32 %v108_v19, %v90_v18 }
  0x2b   :  { %v111_v26 = vsub.f32 %v109_v22, %v87_v1  ;;  %v116_v27 = vmul.f32 %v109_v22, %v91_v20 }
  0x2c   :  { %v112_v28 = vmul.f32 %v110_v24, %v88_v21 }
  0x2d   :  { %v113_v29 = vmul.f32 %v111_v26, %v89_v23  ;;  %v117_v30 = vadd.f32 %v116_v27, %v115_v25 }
  0x2f   :  { %v114_v31 = vadd.f32 %v113_v29, %v112_v28  ;;  %123 = vst [vmem:[%s202_s3 + $0x8] sm:$0xff] %v117_v30 }
  0x31   :  { %122 = vst [vmem:[%s202_s3] sm:$0xff] %v114_v31 }

</bundles_post_ra>
